<compile_context>
chip_gen: v7x
topology: tpu7x:2x2x1
jax: 0.10.0
libtpu: 0.0.40
codegen_flags: <defaults>
</compile_context>

<pallas_src>
import functools

import numpy as np
import jax
import jax.numpy as jnp
from jax import lax
from jax.experimental import pallas as pl
from jax.experimental.pallas import tpu as pltpu


# ---------------------------------------------------------------------------
# Small static helpers
# ---------------------------------------------------------------------------
def _round_up(x, m):
    return (x + m - 1) // m * m


def _shift_cols(v, q):
    """result[:, j] = v[:, j + q]; zero-filled where j + q is out of range."""
    if q == 0:
        return v
    rows = v.shape[0]
    fill = jnp.zeros((rows, abs(q)), v.dtype)
    if q > 0:
        return jnp.concatenate([v[:, q:], fill], axis=1)
    return jnp.concatenate([fill, v[:, :q]], axis=1)


# ---------------------------------------------------------------------------
# The fused Pallas kernel (one grid step == one batch element)
# ---------------------------------------------------------------------------
def _basic_block_kernel(*refs, n_taps, n_phase, c_in_p, c_out_p, l1,
                        pad1, pad2, pool_pad, phase_len,
                        is_first_block, use_bn, downsample):
    it = iter(refs)
    x_ref = next(it)                                   # (1, n_phase*c_in_p, Lp)
    pre_bn = (not is_first_block) and use_bn
    if pre_bn:
        bn1s_ref = next(it)
        bn1b_ref = next(it)
    w1_ref = next(it)                                  # (c_out_p, K*c_in_p)
    a2_ref = next(it)                                  # (c_out_p, 1)
    c2_ref = next(it)                                  # (c_out_p, 1)
    w2_ref = next(it)                                  # (c_out_p, K*c_out_p)
    b2_ref = next(it)                                  # (c_out_p, 1)
    emb_ref = next(it)                                 # (c_out_p, c_in_p)
    o_ref = next(it)                                   # (1, c_out_p, Lp)

    xall = x_ref[0]                                    # (n_phase*c_in_p, Lp)
    lanes = xall.shape[-1]
    col_in = lax.broadcasted_iota(jnp.int32, (c_in_p, lanes), 1)

    # --- pre-activation (bn1 + relu1; dropout1 = identity in eval mode) -----
    raw, act = [], []
    for r in range(n_phase):
        blk = xall[r * c_in_p:(r + 1) * c_in_p, :]
        raw.append(blk)                                # raw x phase (for pool)
        a = blk
        if not is_first_block:
            if use_bn:
                a = a * bn1s_ref[...] + bn1b_ref[...]
            a = jnp.maximum(a, 0.0)
            if use_bn:
                # re-zero SAME-pad / lane-pad columns polluted by the BN shift
                a = jnp.where(col_in < phase_len[r], a, 0.0)
        act.append(a)

    # --- conv1: stride folded into the polyphase layout, one fused matmul ---
    taps1 = []
    for k in range(n_taps):
        d = k - pad1
        r = d % n_phase
        q = (d - r) // n_phase
        taps1.append(_shift_cols(act[r], q))
    h1 = taps1[0] if n_taps == 1 else jnp.concatenate(taps1, axis=0)
    y1 = jnp.dot(w1_ref[...], h1, preferred_element_type=jnp.float32)

    # --- bn2 (+ folded conv1 bias) + relu2 (dropout2 = identity) ------------
    h2 = jnp.maximum(y1 * a2_ref[...] + c2_ref[...], 0.0)
    col_out = lax.broadcasted_iota(jnp.int32, (c_out_p, lanes), 1)
    h2 = jnp.where(col_out < l1, h2, 0.0)   # SAME zero pad for conv2 + kill lane-pad junk

    # --- conv2 (stride 1): one fused matmul over K shifted copies -----------
    taps2 = [_shift_cols(h2, k - pad2) for k in range(n_taps)]
    h2s = taps2[0] if n_taps == 1 else jnp.concatenate(taps2, axis=0)
    y2 = jnp.dot(w2_ref[...], h2s, preferred_element_type=jnp.float32)

    # --- identity: SAME zero-pad max-pool (if downsample) + channel embed ---
    if downsample:
        pooled = None
        for k in range(n_phase):
            d = k - pool_pad
            r = d % n_phase
            q = (d - r) // n_phase
            t = _shift_cols(raw[r], q)
            pooled = t if pooled is None else jnp.maximum(pooled, t)
    else:
        pooled = raw[0]
    ident = jnp.dot(emb_ref[...], pooled, preferred_element_type=jnp.float32)

    o_ref[0] = (y2 + ident + b2_ref[...]).astype(o_ref.dtype)


# ---------------------------------------------------------------------------
# Wrapper: layout plumbing + pallas_call
# ---------------------------------------------------------------------------
def _stack_tap_weights(w, groups, c_out_p, c_in_p):
    """PyTorch grouped Conv1d weight (c_out, c_in//groups, K) ->
       dense stacked-tap matrix (c_out_p, K*c_in_p)."""
    c_out, cig, k = w.shape
    cog = c_out // groups
    out = jnp.zeros((c_out_p, k * c_in_p), jnp.float32)
    for g in range(groups):
        for kk in range(k):
            blk = w[g * cog:(g + 1) * cog, :, kk].astype(jnp.float32)
            out = out.at[g * cog:(g + 1) * cog,
                         kk * c_in_p + g * cig: kk * c_in_p + (g + 1) * cig].set(blk)
    return out


def _bn_fold(gamma, beta, mean, var, c_pad, eps=1e-5):
    scale = gamma / jnp.sqrt(var + eps)
    shift = beta - mean * scale
    scale = jnp.pad(scale, (0, c_pad - scale.shape[0]))[:, None]
    shift = jnp.pad(shift, (0, c_pad - shift.shape[0]))[:, None]
    return scale.astype(jnp.float32), shift.astype(jnp.float32)


def basic_block_forward(x, params, *, in_channels, out_channels, kernel_size,
                        stride, groups, downsample, use_bn, use_do,
                        is_first_block):
    del use_do  # Dropout is the identity in eval mode.
    b, c_in, l_in = x.shape
    assert c_in == in_channels
    k = kernel_size
    s = stride if downsample else 1

    c_in_p = _round_up(in_channels, 8)
    c_out_p = _round_up(out_channels, 8)

    # SAME padding arithmetic (matches MyConv1dPadSame / MyMaxPool1dPadSame)
    l1 = (l_in + s - 1) // s
    p1 = max(0, (l1 - 1) * s + k - l_in)
    pad1 = p1 // 2
    l2 = l1                                  # conv2 is stride-1 SAME
    pad2 = (k - 1) // 2
    pool_pad = (s - 1) // 2                  # max-pool pad uses stride-1 formula
    l_pad = _round_up(max(l1, 1), 128)       # lane-dense spatial axis

    # Polyphase (stride-de-interleaved) channel/lane zero-padded input layout.
    phase_len = tuple((l_in - r + s - 1) // s for r in range(s))
    x_ph = jnp.zeros((b, s * c_in_p, l_pad), jnp.float32)
    for r in range(s):
        ph = x[:, :, r::s].astype(jnp.float32)
        x_ph = x_ph.at[:, r * c_in_p:r * c_in_p + c_in, :phase_len[r]].set(ph)

    # Weights / constants in stacked-tap, sublane-padded layouts.
    w1s = _stack_tap_weights(params["w1"], groups, c_out_p, c_in_p)
    w2s = _stack_tap_weights(params["w2"], groups, c_out_p, c_out_p)
    b1 = jnp.pad(params["b1"].astype(jnp.float32), (0, c_out_p - out_channels))[:, None]
    b2 = jnp.pad(params["b2"].astype(jnp.float32), (0, c_out_p - out_channels))[:, None]
    if use_bn:
        bn2s, bn2b = _bn_fold(params["bn2_gamma"], params["bn2_beta"],
                              params["bn2_mean"], params["bn2_var"], c_out_p)
        a2 = bn2s
        c2 = bn2b + bn2s * b1                # fold conv1 bias into bn2 shift
    else:
        a2 = jnp.ones((c_out_p, 1), jnp.float32)
        c2 = b1
    pre_bn = (not is_first_block) and use_bn
    if pre_bn:
        bn1s, bn1b = _bn_fold(params["bn1_gamma"], params["bn1_beta"],
                              params["bn1_mean"], params["bn1_var"], c_in_p)

    # 0/1 channel embedding placing the C_in identity channels at offset ch1.
    ch1 = (out_channels - in_channels) // 2 if out_channels != in_channels else 0
    emb_np = np.zeros((c_out_p, c_in_p), np.float32)
    for i in range(in_channels):
        emb_np[ch1 + i, i] = 1.0
    emb = jnp.asarray(emb_np)

    def _const_spec(a):
        return pl.BlockSpec(a.shape, lambda i: (0,) * a.ndim)

    args = [x_ph]
    in_specs = [pl.BlockSpec((1, s * c_in_p, l_pad), lambda i: (i, 0, 0))]
    if pre_bn:
        args += [bn1s, bn1b]
        in_specs += [_const_spec(bn1s), _const_spec(bn1b)]
    args += [w1s, a2, c2, w2s, b2, emb]
    in_specs += [_const_spec(t) for t in (w1s, a2, c2, w2s, b2, emb)]

    kernel = functools.partial(
        _basic_block_kernel, n_taps=k, n_phase=s, c_in_p=c_in_p,
        c_out_p=c_out_p, l1=l1, pad1=pad1, pad2=pad2, pool_pad=pool_pad,
        phase_len=phase_len, is_first_block=is_first_block, use_bn=use_bn,
        downsample=downsample)

    out = pl.pallas_call(
        kernel,
        grid=(b,),
        in_specs=in_specs,
        out_specs=pl.BlockSpec((1, c_out_p, l_pad), lambda i: (i, 0, 0)),
        out_shape=jax.ShapeDtypeStruct((b, c_out_p, l_pad), jnp.float32),
        compiler_params=pltpu.CompilerParams(
            dimension_semantics=("parallel",)),
    )(*args)

    return out[:, :out_channels, :l2]                  # (B, C_out, L_out)


# ---------------------------------------------------------------------------
# Parameter init (PyTorch layouts)
# ---------------------------------------------------------------------------
def init_params(key, in_channels, out_channels, kernel_size, groups):
    ks = jax.random.split(key, 12)
    s = 0.3
    return {
        "w1": s * jax.random.normal(ks[0], (out_channels, in_channels // groups,
                                            kernel_size), jnp.float32),
        "b1": s * jax.random.normal(ks[1], (out_channels,), jnp.float32),
        "w2": s * jax.random.normal(ks[2], (out_channels, out_channels // groups,
                                            kernel_size), jnp.float32),
        "b2": s * jax.random.normal(ks[3], (out_channels,), jnp.float32),
        "bn1_gamma": 1.0 + 0.1 * jax.random.normal(ks[4], (in_channels,), jnp.float32),
        "bn1_beta": 0.1 * jax.random.normal(ks[5], (in_channels,), jnp.float32),
        "bn1_mean": 0.1 * jax.random.normal(ks[6], (in_channels,), jnp.float32),
        "bn1_var": 0.5 + jax.random.uniform(ks[7], (in_channels,), jnp.float32),
        "bn2_gamma": 1.0 + 0.1 * jax.random.normal(ks[8], (out_channels,), jnp.float32),
        "bn2_beta": 0.1 * jax.random.normal(ks[9], (out_channels,), jnp.float32),
        "bn2_mean": 0.1 * jax.random.normal(ks[10], (out_channels,), jnp.float32),
        "bn2_var": 0.5 + jax.random.uniform(ks[11], (out_channels,), jnp.float32),
    }


# ---------------------------------------------------------------------------
# Pure-numpy reference (PyTorch eval-mode semantics)
# ---------------------------------------------------------------------------
def _ref_bn(h, gamma, beta, mean, var, eps=1e-5):
    return ((h - mean[None, :, None]) / np.sqrt(var[None, :, None] + eps)
            * gamma[None, :, None] + beta[None, :, None])


def _ref_conv1d_same(h, w, b, stride, groups):
    bsz, c_in, l = h.shape
    c_out, cig, k = w.shape
    out_dim = (l + stride - 1) // stride
    p = max(0, (out_dim - 1) * stride + k - l)
    pl_, pr_ = p // 2, p - p // 2
    hp = np.pad(h, ((0, 0), (0, 0), (pl_, pr_)))
    l_out = (hp.shape[-1] - k) // stride + 1
    out = np.zeros((bsz, c_out, l_out), np.float32)
    cog = c_out // groups
    for g in range(groups):
        wg = w[g * cog:(g + 1) * cog]
        hg = hp[:, g * cig:(g + 1) * cig]
        for j in range(l_out):
            seg = hg[:, :, j * stride:j * stride + k]
            out[:, g * cog:(g + 1) * cog, j] = np.einsum("bck,ock->bo", seg, wg)
    return out + b[None, :, None]


def _ref_maxpool_same(h, k):
    bsz, c, l = h.shape
    p = max(0, (l - 1) + k - l)
    pl_, pr_ = p // 2, p - p // 2
    hp = np.pad(h, ((0, 0), (0, 0), (pl_, pr_)))
    l_out = (hp.shape[-1] - k) // k + 1
    out = np.zeros((bsz, c, l_out), np.float32)
    for j in range(l_out):
        out[:, :, j] = hp[:, :, j * k:j * k + k].max(-1)
    return out


def _ref_basic_block(x, p, *, in_channels, out_channels, kernel_size, stride,
                     groups, downsample, use_bn, use_do, is_first_block):
    del use_do
    eff_stride = stride if downsample else 1
    identity = x
    out = x
    if not is_first_block:
        if use_bn:
            out = _ref_bn(out, p["bn1_gamma"], p["bn1_beta"],
                          p["bn1_mean"], p["bn1_var"])
        out = np.maximum(out, 0.0)
    out = _ref_conv1d_same(out, p["w1"], p["b1"], eff_stride, groups)
    if use_bn:
        out = _ref_bn(out, p["bn2_gamma"], p["bn2_beta"],
                      p["bn2_mean"], p["bn2_var"])
    out = np.maximum(out, 0.0)
    out = _ref_conv1d_same(out, p["w2"], p["b2"], 1, groups)
    if downsample:
        identity = _ref_maxpool_same(identity, eff_stride)
    if out_channels != in_channels:
        ch1 = (out_channels - in_channels) // 2
        ch2 = out_channels - in_channels - ch1
        identity = np.pad(identity, ((0, 0), (ch1, ch2), (0, 0)))
    return (out + identity).astype(np.float32)


if __name__ == "__main__":
    # Small shapes consistent with the module: batch=2, in_channels=4, L=16.
    B, C_IN, L = 2, 4, 16
    C_OUT, K, STRIDE, GROUPS = 8, 3, 2, 1
    DOWNSAMPLE, USE_BN, USE_DO, FIRST = True, True, True, False

    key = jax.random.PRNGKey(0)
    kx, kp = jax.random.split(key)
    x = jax.random.normal(kx, (B, C_IN, L), jnp.float32)
    params = init_params(kp, C_IN, C_OUT, K, GROUPS)

    fwd = jax.jit(functools.partial(
        basic_block_forward, in_channels=C_IN, out_channels=C_OUT,
        kernel_size=K, stride=STRIDE, groups=GROUPS, downsample=DOWNSAMPLE,
        use_bn=USE_BN, use_do=USE_DO, is_first_block=FIRST))
    out = jax.block_until_ready(fwd(x, params))

    ref = _ref_basic_block(
        np.asarray(x), {kk: np.asarray(v) for kk, v in params.items()},
        in_channels=C_IN, out_channels=C_OUT, kernel_size=K, stride=STRIDE,
        groups=GROUPS, downsample=DOWNSAMPLE, use_bn=USE_BN, use_do=USE_DO,
        is_first_block=FIRST)

    assert out.shape == ref.shape == (B, C_OUT, 8), (out.shape, ref.shape)
    np.testing.assert_allclose(np.asarray(out), ref, rtol=1e-3, atol=1e-4)

    print("KERNEL_OK")
</pallas_src>

<mosaic_0001>
module attributes {stable_mosaic.version = 11 : i64} {
  func.func @_basic_block_kernel(%arg0: i32, %arg1: memref<1x16x128xf32, #tpu.memory_space<vmem>>, %arg2: memref<8x1xf32, #tpu.memory_space<vmem>>, %arg3: memref<8x1xf32, #tpu.memory_space<vmem>>, %arg4: memref<8x24xf32, #tpu.memory_space<vmem>>, %arg5: memref<8x1xf32, #tpu.memory_space<vmem>>, %arg6: memref<8x1xf32, #tpu.memory_space<vmem>>, %arg7: memref<8x24xf32, #tpu.memory_space<vmem>>, %arg8: memref<8x1xf32, #tpu.memory_space<vmem>>, %arg9: memref<8x8xf32, #tpu.memory_space<vmem>>, %arg10: memref<1x8x128xf32, #tpu.memory_space<vmem>>) attributes {dimension_semantics = [#tpu.dimension_semantics<parallel>], iteration_bounds = array<i64: 2>, scalar_prefetch = 0 : i64, scratch_operands = 0 : i64, tpu.core_type = #tpu.core_type<tc>, window_params = [{transform_indices = @transform_0, window_bounds = array<i64: 1, 16, 128>}, {pipeline_mode = #tpu.pipeline_mode<synchronous>, transform_indices = @transform_1, window_bounds = array<i64: 8, 1>}, {pipeline_mode = #tpu.pipeline_mode<synchronous>, transform_indices = @transform_2, window_bounds = array<i64: 8, 1>}, {pipeline_mode = #tpu.pipeline_mode<synchronous>, transform_indices = @transform_3, window_bounds = array<i64: 8, 24>}, {pipeline_mode = #tpu.pipeline_mode<synchronous>, transform_indices = @transform_4, window_bounds = array<i64: 8, 1>}, {pipeline_mode = #tpu.pipeline_mode<synchronous>, transform_indices = @transform_5, window_bounds = array<i64: 8, 1>}, {pipeline_mode = #tpu.pipeline_mode<synchronous>, transform_indices = @transform_6, window_bounds = array<i64: 8, 24>}, {pipeline_mode = #tpu.pipeline_mode<synchronous>, transform_indices = @transform_7, window_bounds = array<i64: 8, 1>}, {pipeline_mode = #tpu.pipeline_mode<synchronous>, transform_indices = @transform_8, window_bounds = array<i64: 8, 8>}, {transform_indices = @transform_9, window_bounds = array<i64: 1, 8, 128>}]} {
    %c0 = arith.constant 0 : index
    %c0_0 = arith.constant 0 : index
    %c0_1 = arith.constant 0 : index
    %0 = vector.load %arg1[%c0, %c0_0, %c0_1] : memref<1x16x128xf32, #tpu.memory_space<vmem>>, vector<1x16x128xf32>
    %1 = vector.shape_cast %0 : vector<1x16x128xf32> to vector<16x128xf32>
    %2 = tpu.iota {dimensions = array<i32: 1>} : vector<8x128xi32>
    %3 = vector.extract_strided_slice %1 {offsets = [0, 0], sizes = [8, 128], strides = [1, 1]} : vector<16x128xf32> to vector<8x128xf32>
    %c0_2 = arith.constant 0 : index
    %c0_3 = arith.constant 0 : index
    %4 = vector.load %arg2[%c0_2, %c0_3] : memref<8x1xf32, #tpu.memory_space<vmem>>, vector<8x1xf32>
    %5 = vector.broadcast %4 : vector<8x1xf32> to vector<8x128xf32>
    %6 = arith.mulf %3, %5 : vector<8x128xf32>
    %c0_4 = arith.constant 0 : index
    %c0_5 = arith.constant 0 : index
    %7 = vector.load %arg3[%c0_4, %c0_5] : memref<8x1xf32, #tpu.memory_space<vmem>>, vector<8x1xf32>
    %8 = vector.broadcast %7 : vector<8x1xf32> to vector<8x128xf32>
    %9 = arith.addf %6, %8 : vector<8x128xf32>
    %cst = arith.constant 0.000000e+00 : f32
    %10 = vector.broadcast %cst : f32 to vector<8x128xf32>
    %11 = arith.maximumf %9, %10 : vector<8x128xf32>
    %c8_i32 = arith.constant 8 : i32
    %12 = vector.broadcast %c8_i32 : i32 to vector<8x128xi32>
    %13 = arith.cmpi slt, %2, %12 : vector<8x128xi32>
    %cst_6 = arith.constant 0.000000e+00 : f32
    %14 = vector.broadcast %cst_6 : f32 to vector<8x128xf32>
    %15 = arith.select %13, %11, %14 : vector<8x128xi1>, vector<8x128xf32>
    %16 = vector.extract_strided_slice %1 {offsets = [8, 0], sizes = [8, 128], strides = [1, 1]} : vector<16x128xf32> to vector<8x128xf32>
    %c0_7 = arith.constant 0 : index
    %c0_8 = arith.constant 0 : index
    %17 = vector.load %arg2[%c0_7, %c0_8] : memref<8x1xf32, #tpu.memory_space<vmem>>, vector<8x1xf32>
    %18 = vector.broadcast %17 : vector<8x1xf32> to vector<8x128xf32>
    %19 = arith.mulf %16, %18 : vector<8x128xf32>
    %c0_9 = arith.constant 0 : index
    %c0_10 = arith.constant 0 : index
    %20 = vector.load %arg3[%c0_9, %c0_10] : memref<8x1xf32, #tpu.memory_space<vmem>>, vector<8x1xf32>
    %21 = vector.broadcast %20 : vector<8x1xf32> to vector<8x128xf32>
    %22 = arith.addf %19, %21 : vector<8x128xf32>
    %cst_11 = arith.constant 0.000000e+00 : f32
    %23 = vector.broadcast %cst_11 : f32 to vector<8x128xf32>
    %24 = arith.maximumf %22, %23 : vector<8x128xf32>
    %c8_i32_12 = arith.constant 8 : i32
    %25 = vector.broadcast %c8_i32_12 : i32 to vector<8x128xi32>
    %26 = arith.cmpi slt, %2, %25 : vector<8x128xi32>
    %cst_13 = arith.constant 0.000000e+00 : f32
    %27 = vector.broadcast %cst_13 : f32 to vector<8x128xf32>
    %28 = arith.select %26, %24, %27 : vector<8x128xi1>, vector<8x128xf32>
    %cst_14 = arith.constant 0.000000e+00 : f32
    %29 = vector.broadcast %cst_14 : f32 to vector<8x1xf32>
    %30 = vector.extract_strided_slice %15 {offsets = [0, 1], sizes = [8, 127], strides = [1, 1]} : vector<8x128xf32> to vector<8x127xf32>
    %31 = tpu.concatenate %30, %29 in 1 : vector<8x127xf32>, vector<8x1xf32> -> vector<8x128xf32>
    %32 = tpu.concatenate %15, %28, %31 in 0 : vector<8x128xf32>, vector<8x128xf32>, vector<8x128xf32> -> vector<24x128xf32>
    %c0_15 = arith.constant 0 : index
    %c0_16 = arith.constant 0 : index
    %33 = vector.load %arg4[%c0_15, %c0_16] : memref<8x24xf32, #tpu.memory_space<vmem>>, vector<8x24xf32>
    %cst_17 = arith.constant dense<0.000000e+00> : vector<8x128xf32>
    %34 = tpu.matmul %33, %32, %cst_17 {dimension_numbers = #tpu.dot_dimension_numbers<[1], [0], [0], [1], [0, 0, 1, 1], [], []>} : vector<8x24xf32>, vector<24x128xf32>, vector<8x128xf32> -> vector<8x128xf32>
    %c0_18 = arith.constant 0 : index
    %c0_19 = arith.constant 0 : index
    %35 = vector.load %arg5[%c0_18, %c0_19] : memref<8x1xf32, #tpu.memory_space<vmem>>, vector<8x1xf32>
    %36 = vector.broadcast %35 : vector<8x1xf32> to vector<8x128xf32>
    %37 = arith.mulf %34, %36 : vector<8x128xf32>
    %c0_20 = arith.constant 0 : index
    %c0_21 = arith.constant 0 : index
    %38 = vector.load %arg6[%c0_20, %c0_21] : memref<8x1xf32, #tpu.memory_space<vmem>>, vector<8x1xf32>
    %39 = vector.broadcast %38 : vector<8x1xf32> to vector<8x128xf32>
    %40 = arith.addf %37, %39 : vector<8x128xf32>
    %cst_22 = arith.constant 0.000000e+00 : f32
    %41 = vector.broadcast %cst_22 : f32 to vector<8x128xf32>
    %42 = arith.maximumf %40, %41 : vector<8x128xf32>
    %43 = tpu.iota {dimensions = array<i32: 1>} : vector<8x128xi32>
    %c8_i32_23 = arith.constant 8 : i32
    %44 = vector.broadcast %c8_i32_23 : i32 to vector<8x128xi32>
    %45 = arith.cmpi slt, %43, %44 : vector<8x128xi32>
    %cst_24 = arith.constant 0.000000e+00 : f32
    %46 = vector.broadcast %cst_24 : f32 to vector<8x128xf32>
    %47 = arith.select %45, %42, %46 : vector<8x128xi1>, vector<8x128xf32>
    %cst_25 = arith.constant 0.000000e+00 : f32
    %48 = vector.broadcast %cst_25 : f32 to vector<8x1xf32>
    %49 = vector.extract_strided_slice %47 {offsets = [0, 0], sizes = [8, 127], strides = [1, 1]} : vector<8x128xf32> to vector<8x127xf32>
    %50 = tpu.concatenate %48, %49 in 1 : vector<8x1xf32>, vector<8x127xf32> -> vector<8x128xf32>
    %cst_26 = arith.constant 0.000000e+00 : f32
    %51 = vector.broadcast %cst_26 : f32 to vector<8x1xf32>
    %52 = vector.extract_strided_slice %47 {offsets = [0, 1], sizes = [8, 127], strides = [1, 1]} : vector<8x128xf32> to vector<8x127xf32>
    %53 = tpu.concatenate %52, %51 in 1 : vector<8x127xf32>, vector<8x1xf32> -> vector<8x128xf32>
    %54 = tpu.concatenate %50, %47, %53 in 0 : vector<8x128xf32>, vector<8x128xf32>, vector<8x128xf32> -> vector<24x128xf32>
    %c0_27 = arith.constant 0 : index
    %c0_28 = arith.constant 0 : index
    %55 = vector.load %arg7[%c0_27, %c0_28] : memref<8x24xf32, #tpu.memory_space<vmem>>, vector<8x24xf32>
    %cst_29 = arith.constant dense<0.000000e+00> : vector<8x128xf32>
    %56 = tpu.matmul %55, %54, %cst_29 {dimension_numbers = #tpu.dot_dimension_numbers<[1], [0], [0], [1], [0, 0, 1, 1], [], []>} : vector<8x24xf32>, vector<24x128xf32>, vector<8x128xf32> -> vector<8x128xf32>
    %57 = arith.maximumf %3, %16 : vector<8x128xf32>
    %c0_30 = arith.constant 0 : index
    %c0_31 = arith.constant 0 : index
    %58 = vector.load %arg9[%c0_30, %c0_31] : memref<8x8xf32, #tpu.memory_space<vmem>>, vector<8x8xf32>
    %cst_32 = arith.constant dense<0.000000e+00> : vector<8x128xf32>
    %59 = tpu.matmul %58, %57, %cst_32 {dimension_numbers = #tpu.dot_dimension_numbers<[1], [0], [0], [1], [0, 0, 1, 1], [], []>} : vector<8x8xf32>, vector<8x128xf32>, vector<8x128xf32> -> vector<8x128xf32>
    %60 = arith.addf %56, %59 : vector<8x128xf32>
    %c0_33 = arith.constant 0 : index
    %c0_34 = arith.constant 0 : index
    %61 = vector.load %arg8[%c0_33, %c0_34] : memref<8x1xf32, #tpu.memory_space<vmem>>, vector<8x1xf32>
    %62 = vector.broadcast %61 : vector<8x1xf32> to vector<8x128xf32>
    %63 = arith.addf %60, %62 : vector<8x128xf32>
    %c0_35 = arith.constant 0 : index
    %c0_36 = arith.constant 0 : index
    %c0_37 = arith.constant 0 : index
    %64 = vector.load %arg10[%c0_35, %c0_36, %c0_37] : memref<1x8x128xf32, #tpu.memory_space<vmem>>, vector<1x8x128xf32>
    %65 = vector.shape_cast %64 : vector<1x8x128xf32> to vector<8x128xf32>
    %66 = vector.shape_cast %63 : vector<8x128xf32> to vector<1x8x128xf32>
    tpu.vector_store %arg10[%c0_35, %c0_36, %c0_37], %66 {strides = array<i32>} : memref<1x8x128xf32, #tpu.memory_space<vmem>>, vector<1x8x128xf32>,
    return
  }
  func.func @transform_0(%arg0: i32) -> (i32, i32, i32) {
    %c0_i32 = arith.constant 0 : i32
    %c0_i32_0 = arith.constant 0 : i32
    %c0_i32_1 = arith.constant 0 : i32
    return %arg0, %c0_i32, %c0_i32_0 : i32, i32, i32
  }
  func.func @transform_1(%arg0: i32) -> (i32, i32) {
    %c0_i32 = arith.constant 0 : i32
    %c0_i32_0 = arith.constant 0 : i32
    %c0_i32_1 = arith.constant 0 : i32
    return %c0_i32, %c0_i32_0 : i32, i32
  }
  func.func @transform_2(%arg0: i32) -> (i32, i32) {
    %c0_i32 = arith.constant 0 : i32
    %c0_i32_0 = arith.constant 0 : i32
    %c0_i32_1 = arith.constant 0 : i32
    return %c0_i32, %c0_i32_0 : i32, i32
  }
  func.func @transform_3(%arg0: i32) -> (i32, i32) {
    %c0_i32 = arith.constant 0 : i32
    %c0_i32_0 = arith.constant 0 : i32
    %c0_i32_1 = arith.constant 0 : i32
    return %c0_i32, %c0_i32_0 : i32, i32
  }
  func.func @transform_4(%arg0: i32) -> (i32, i32) {
    %c0_i32 = arith.constant 0 : i32
    %c0_i32_0 = arith.constant 0 : i32
    %c0_i32_1 = arith.constant 0 : i32
    return %c0_i32, %c0_i32_0 : i32, i32
  }
  func.func @transform_5(%arg0: i32) -> (i32, i32) {
    %c0_i32 = arith.constant 0 : i32
    %c0_i32_0 = arith.constant 0 : i32
    %c0_i32_1 = arith.constant 0 : i32
    return %c0_i32, %c0_i32_0 : i32, i32
  }
  func.func @transform_6(%arg0: i32) -> (i32, i32) {
    %c0_i32 = arith.constant 0 : i32
    %c0_i32_0 = arith.constant 0 : i32
    %c0_i32_1 = arith.constant 0 : i32
    return %c0_i32, %c0_i32_0 : i32, i32
  }
  func.func @transform_7(%arg0: i32) -> (i32, i32) {
    %c0_i32 = arith.constant 0 : i32
    %c0_i32_0 = arith.constant 0 : i32
    %c0_i32_1 = arith.constant 0 : i32
    return %c0_i32, %c0_i32_0 : i32, i32
  }
  func.func @transform_8(%arg0: i32) -> (i32, i32) {
    %c0_i32 = arith.constant 0 : i32
    %c0_i32_0 = arith.constant 0 : i32
    %c0_i32_1 = arith.constant 0 : i32
    return %c0_i32, %c0_i32_0 : i32, i32
  }
  func.func @transform_9(%arg0: i32) -> (i32, i32, i32) {
    %c0_i32 = arith.constant 0 : i32
    %c0_i32_0 = arith.constant 0 : i32
    %c0_i32_1 = arith.constant 0 : i32
    return %arg0, %c0_i32, %c0_i32_0 : i32, i32, i32
  }
}

</mosaic_0001>

<bundles_post_ra>
// kernel: basic_block_forward.1
= control target key start
LH: loop header
LB: loop body
LE: loop exit
PB: predicated region body
PF: predicated region fallthrough
CT: control target
= control target key end

     0   :  { %14 = vsyncpa [#allocation3], 0  ;;  %s1067_s0 = inlined_call_operand.vmem [shape: f32[2,16,128], index: 0, kind: input, shape index: {}]   ;;  %s1068_s1 = inlined_call_operand.vmem [shape: f32[8,1], index: 1, kind: input, shape index: {}]   ;;  %s1069_s2 = inlined_call_operand.vmem [shape: f32[8,1], index: 2, kind: input, shape index: {}]   ;;  %s1070_s3 = inlined_call_operand.vmem [shape: f32[8,24], index: 3, kind: input, shape index: {}]   ;;  %s1071_s4 = inlined_call_operand.vmem [shape: f32[8,1], index: 4, kind: input, shape index: {}]   ;;  %s1072_s5 = inlined_call_operand.vmem [shape: f32[8,1], index: 5, kind: input, shape index: {}]   ;;  %s1073_s6 = inlined_call_operand.vmem [shape: f32[8,24], index: 6, kind: input, shape index: {}]   ;;  %s1074_s7 = inlined_call_operand.vmem [shape: f32[8,1], index: 7, kind: input, shape index: {}]   ;;  %s1075_s8 = inlined_call_operand.vmem [shape: f32[8,8], index: 8, kind: input, shape index: {}]   ;;  %s1076_s9 = inlined_call_operand.hbm [shape: f32[2,8,128], index: 9, kind: output, shape index: {}]  }
   0x1   :  { %16 = vsyncpa [#allocation3 + $0x1], 0  ;;  %s925_s30 = smov 0   ;;  %s927_s10 = smov 0  }
   0x2   :  { %s929_s11 = smov 0   ;;  %s931_s12 = smov 0  }
   0x3 LB: > { %s946_s13 = sadd.s32 4294967295, %s866_s12   ;;  %s694_s14 = sadd.s32 4294967294, %s866_s12   ;;  %s866_s12 = sphi %s931_s12, %s1082_s12   ;;  %s862_s11 = sphi %s929_s11, %s1081_s11   ;;  %s858_s10 = sphi %s927_s10, %s1080_s10   ;;  %s854_s30 = sphi %s925_s30, %s1079_s30  }
   0x4   : > { %s950_s15 = sadd.s32 1, %s866_s12   ;;  %s223_s16 = sadd.s32 1, %s862_s11 }
   0x5   : > { %s220_s17 = ssub.s32 %s866_s12, %s950_s15  ;;  %p233_p0 = scmp.ne.s32.totalorder %s862_s11, %s858_s10 }
   0x6   : > { %p221_p1 = scmp.eq.s32.totalorder %s220_s17, 0  ;;  %p234_p2 = scmp.eq.s32.totalorder %s946_s13, 1 }
   0x7   : > { %p239_p3 = scmp.ne.s32.totalorder %s858_s10, %s854_s30  ;;  %p240_p4 = scmp.eq.s32.totalorder %s694_s14, 1 }
   0x8   : > { %s961_s18 = scalar_select %p221_p1, %s862_s11, %s223_s16  }
   0x9   : > { %p963_p5 = por %p234_p2, %p233_p0  ;;  %p967_p6 = por %p240_p4, %p239_p3 }
   0xa   : > { %p697_p7 = scmp.ge.s32.totalorder %s866_s12, 1  ;;  %p290_p8 = scmp.lt.s32.totalorder %s866_s12, 3 }
   0xc   : > { %p291_p9 = pnand %p697_p7, %p290_p8 }
   0xd   : > { %v335_v0 = vld [vmem:[%s1068_s1] sm:$0xff] (!%p291_p9)  ;;  %v868_v1 = vmov (!%p291_p9), 0   ;;  %v869_v4 = vmov (!%p291_p9), 0.0|0.0   ;;  %v870_v5 = vmov (!%p291_p9), 0.0   ;;  %p326_p10 = scmp.lt.s32.totalorder (!%p291_p9), %s946_s13, 1  ;;  %v333_v6 = vlaneseq (!%p291_p9)  ;;  %s872_s17 = smov (!%p291_p9), 127  }
   0xe   : > { %294 = sbr.rel (%p291_p9) target bundleno = 839 (0x347), region = 56  ;;  %802 = vset.pattern.permute.xlu0 (!%p291_p9), %v868_v1  ;;  %803 = vset.pattern.permute.xlu1 (!%p291_p9), %v868_v1  ;;  %v342_v2 = vld [vmem:[%s1069_s2] sm:$0xff] (!%p291_p9)  ;;  %vm871_vm0 = vmmov (!%p291_p9), 0   ;;  %vm360_vm3 = vcmask (!%p291_p9), 1039360   ;;  %vm363_vm4 = vcmask (!%p291_p9), 195584   ;;  %vm466_vm5 = vcmask (!%p291_p9), 64512  }
   0xf   : > { %338 = vperm.xlu0 (!%p291_p9), %802, %v335_v0   ;;  %v444_v3 = vld [vmem:[%s1072_s5] sm:$0xff] (!%p291_p9)  ;;  %749 = vmatprep.subr.bf16.mxu0 (!%p291_p9), %v869_v4  ;;  %v334_v10 = vand.u32 (!%p291_p9), 127, %v333_v6  ;;  %vm457_vm6 = vcmask (!%p291_p9), 7168   ;;  %s712_s22 = sshll.u32 (!%p291_p9), %s946_s13, 7 }
  0x10   : > { %735 = vmatprep.subr.mxu1 (!%p291_p9), %v870_v5  ;;  %732 = vmatprep.mubr.msk.f32.mxu0 (!%p291_p9), %vm871_vm0, %v870_v5  ;;  %v437_v20 = vld [vmem:[%s1071_s4] sm:$0xff] (!%p291_p9)  ;;  %vm706_vm7 = vmneg (!%p291_p9), %vm457_vm6 }
  0x11   : > { %737 = vmatprep.mubr.msk.f32.mxu1 (!%p291_p9), %vm871_vm0, %v870_v5  ;;  %vm350_vm1 = vcmp.lt.s32.totalorder (!%p291_p9), %v334_v10, 8  ;;  %v362_v21 = vld [vmem:[%s1070_s3] sm:$0xff] (!%p291_p9) }
  0x12   : > { %vm751_vm2 = vmpackc.low (!%p291_p9), %vm350_vm1, %vm350_vm1  ;;  %v465_v24 = vld [vmem:[%s1075_s8] sm:$0xff] (!%p291_p9) }
  0x13   : > { %345 = vperm.xlu0 (!%p291_p9), %802, %v342_v2   ;;  %v613_v33 = vld [vmem:[%s1074_s7] sm:$0xff] (!%p291_p9)  ;;  %vm755_vm8 = vmpackc.low (!%p291_p9), %vm350_vm1, %vm706_vm7 }
  0x14   : > { %v463_v36 = vld [vmem:[%s1073_s6] sm:$0xff] (!%p291_p9) }
  0x15   : > { %s327_s27 = scalar_select %p326_p10, %s946_s13, 1 }
  0x16   : > { %s874_s13 = smov [#allocation2]  }
  0x17   : > { %447 = vperm.xlu0 %802, %v444_v3   ;;  %s715_s28 = sshll.u32 %s327_s27, 4  ;;  %s873_s27 = smov 1  }
  0x18   : > { %s330_s16 = scalar_lea.vmem %s1067_s0, %s715_s28  ;;  %s808_s14 = sshll.u32 %s874_s13, 4  ;;  %s809_s14 = int_to_ptr.vmem [resolvable:$false] %s808_s14 }
  0x19   : > { %v331_v8 = vld [vmem:[%s330_s16] sm:$0xff]  ;;  %v332_v9 = vld [vmem:[%s330_s16 + $0x8] sm:$0xff]  ;;  %s810_s16 = scalar_lea.vmem %s809_s14, 256 }
  0x1a   : > { %v464_v23 = vmax.f32 %v331_v8, %v332_v9 }
  0x1c   : > { %736 = vmatpush3.msra.mxu1 %v464_v23 }
  0x1d   : > { %738 = vmatmul.mubr.msk.f32.vlgmr.msra.gmra.mrb[0].mxu1 %vm466_vm5, %v465_v24  ;;  %753 = vmatprep.subr.bf16.mxu1 %v869_v4 }
  0x1e   : > { %746 = vmatprep.mubr.msk.f32.mxu1 %vm871_vm0, %v870_v5 }
  0x8e   : > { %v339_v7 = vpop.permute.xlu0 %338 }
  0x8f   : > { %v341_v11 = vmul.f32 %v339_v7, %v331_v8  ;;  %v352_v12 = vmul.f32 %v339_v7, %v332_v9 }
  0x92   : > { %v346_v13 = vpop.permute.xlu0 %345 }
  0x93   : > { %v348_v14 = vadd.f32 %v346_v13, %v341_v11  ;;  %v353_v15 = vadd.f32 %v352_v12, %v346_v13 }
  0x95   : > { %v349_v16 = vmax.f32 %v348_v14, 0.0  ;;  %v354_v17 = vmax.f32 %v353_v15, 0.0 }
  0x96   : > { %v448_v29 = vpop.permute.xlu0 %447 }
  0x97   : > { %v351_v18 = vsel %vm350_vm1, %v349_v16, 0.0  ;;  %v750_v19 = vpack.c.bf16 %v354_v17, %v349_v16 }
  0x98   : > { %357 = vrot.lane.b32.xlu1 %v351_v18, %s872_s17 }
  0x99   : > { %752 = vmatpush3.bf16.msk.msra.mxu0 %vm751_vm2, %v750_v19 }
  0x9a   : > { %730 = vmatprep.subr.mxu0 %v870_v5 }
  0x9c   : > { %440 = vperm.xlu1 %803, %v437_v20  }
  0xf0   : > { %v536_v38 = vpop.f32.mrb[0].mxu1 }
  0xf1   : > { %v739_v39 = vpop.f32.mrb[1].mxu1 }
 0x10a   : > { %v358_v22 = vpop.permute.xlu1 %357 }
 0x10b   : > { %731 = vmatpush3.msk.msra.mxu0 %vm360_vm3, %v358_v22 }
 0x10c   : > { %733 = vmatmul.mubr.msk.f32.vlgmr.msra.gmra.mrb[0].mxu0 %vm363_vm4, %v362_v21 }
 0x11b   : > { %v441_v25 = vpop.permute.xlu1 %440 }
 0x1df   : > { %v433_v26 = vpop.f32.mrb[0].mxu0 }
 0x1e0   : > { %v443_v27 = vmul.f32 %v441_v25, %v433_v26  ;;  %v734_v28 = vpop.f32.mrb[1].mxu0 }
 0x1e2   : > { %v450_v30 = vadd.f32 %v448_v29, %v443_v27 }
 0x1e4   : > { %v451_v31 = vmax.f32 %v450_v30, 0.0 }
 0x1e6   : > { %v452_v32 = vsel %vm350_vm1, %v451_v31, 0.0 }
 0x1e7   : > { %459 = vrot.lane.b32.xlu0 %v452_v32, %s872_s17  ;;  %454 = vrot.lane.b32.xlu1 %v452_v32, %s873_s27  ;;  %s323_s17 = sand.u32 1, %s858_s10   ;;  %s1025_s27 = scalar_lea.hbm %s1076_s9, %s712_s22 }
 0x1e8   : > { %s698_s21 = sshll.u32 %s323_s17, 3  ;;  %s622_s28 = scalar_lea.sflag [#allocation3], %s323_s17 }
 0x1e9   : > { %s325_s23 = scalar_lea.vmem [#allocation2], %s698_s21 }
 0x1ea   : > { %s635_s24 = sshll.u32 %s325_s23, 4  ;;  %s1027_s24 = int_to_ptr.vmem [resolvable:$true] %s635_s24 }
 0x1eb   : > { %616 = vperm.xlu1 %803, %v613_v33   ;;  %s804_s29 = scalar_lea.vmem %s1027_s24, 128  ;;  %p811_p0 = scmp.lt.s32.totalorder %s1027_s24, %s809_s14 }
 0x1ec   : > { %p805_p11 = scmp.ne.s32.totalorder %s1027_s24, %s804_s29  ;;  %p812_p1 = scmp.lt.s32.totalorder %s810_s16, %s804_s29 }
 0x1ee   : > { %p806_p12 = pnand %p805_p11, %p963_p5  ;;  %p813_p2 = por %p812_p1, %p811_p0 }
 0x1f0   : > { %p807_p13 = pneg %p806_p12 }
 0x1f2   : > { %p814_p3 = pnand %p813_p2, %p807_p13 }
 0x259   : > { %v455_v34 = vpop.permute.xlu1 %454  ;;  %v460_v37 = vpop.permute.xlu0 %459 }
 0x25a   : > { %v754_v35 = vpack.c.bf16 %v451_v31, %v455_v34 }
 0x25c   : > { %756 = vmatpush3.bf16.msk.msra.mxu1 %vm755_vm8, %v754_v35 }
 0x25d   : > { %744 = vmatprep.subr.mxu1 %v870_v5 }
 0x260   : > { %745 = vmatpush3.msk.msra.mxu1 %vm360_vm3, %v460_v37 }
 0x261   : > { %747 = vmatmul.mubr.msk.f32.vlgmr.msra.gmra.mrb[2].mxu1 %vm363_vm4, %v463_v36 }
 0x26a   : > { %v617_v43 = vpop.permute.xlu1 %616 }
 0x334   : > { %v609_v40 = vpop.f32.mrb[2].mxu1 }
 0x335   : > { %v610_v41 = vadd.f32 %v609_v40, %v536_v38  ;;  %v748_v42 = vpop.f32.mrb[3].mxu1 }
 0x337   : > { %v619_v44 = vadd.f32 %v617_v43, %v610_v41 }
 0x339   : > { %620 = vst [vmem:[%s325_s23] sm:$0xff] %v619_v44 }
 0x33a   : > { %817 = shalt.err (!%p814_p3)
}
 0x33b   : > { %s818_s17 = scalar_lea.hbm %s1025_s27, 128  ;;  %s822_s23 = scalar_lea.hbm %s1076_s9, 256 }
 0x33c   : > { %p819_p4 = scmp.ne.s32.totalorder %s1025_s27, %s818_s17  ;;  %p823_p9 = scmp.lt.u32.totalorder %s1025_s27, %s1076_s9 }
 0x33d   : > { %p824_p10 = scmp.lt.u32.totalorder %s822_s23, %s818_s17  ;;  %p826_p12 = scmp.lt.u32.totalorder %s818_s17, %s1025_s27 }
 0x33e   : > { %p820_p7 = pnand %p819_p4, %p963_p5 }
 0x33f   : > { %p825_p11 = por %p824_p10, %p823_p9 }
 0x340   : > { %p821_p8 = pneg %p820_p7 }
 0x341   : > { %p827_p13 = por %p826_p12, %p825_p11 }
 0x343   : > { %p828_p0 = pnand %p827_p13, %p821_p8 }
 0x345   : > { %831 = shalt.err (!%p828_p0)
}
 0x346   : > { %757 = dma.vmem_to_hbm [thread:$0]  (%p963_p5), %s1027_s24, 128, %s1025_s27, %s622_s28  }
 0x347 PF: > { %p763_p1 = scmp.ge.s32.totalorder %s866_s12, 2  ;;  %s647_s29 = sand.u32 1, %s854_s30  }
 0x348   : > { %s648_s13 = scalar_lea.sflag [#allocation3], %s647_s29 }
 0x349   : > { %p760_p2 = pnand %p763_p1, %p967_p6 }
 0x34b   : > { %849 = dma.done.wait (!%p760_p2), %s648_s13, 128  }
 0x34c   : > { %851 = vsyncadd (!%p760_p2), %s648_s13, 4294967168  ;;  %p19_p3 = scmp.ge.s32.totalorder %s950_s15, 4   ;;  %s1079_s30 = smov %s858_s10 }
 0x34d   : > { %s1080_s10 = smov %s862_s11  ;;  %s1081_s11 = smov %s961_s18 }
 0x34e   : > { %s1082_s12 = smov %s950_s15  ;;  %21 = sbr.rel (!%p19_p3) target bundleno = 3 (0x3), region = 91 }
 0x355   :  { %653 = vsyncpa [#allocation3], 1 }
 0x356   :  { %655 = vsyncpa [#allocation3 + $0x1], 1 }

</bundles_post_ra>
